<compile_context>
chip_gen: v6e
topology: v6e:2x2x1
jax: 0.10.0
libtpu: 0.0.40
codegen_flags: <defaults>
</compile_context>

<pallas_src>
import jax
import jax.numpy as jnp
from jax.experimental import pallas as pl
from jax.experimental.pallas import tpu as pltpu


def _build_pe_table(d_model: int, max_len: int) -> jnp.ndarray:
    """Deterministic sinusoidal table, matching the PyTorch __init__ loop."""
    pos = jnp.arange(max_len, dtype=jnp.float32)[:, None]          # (max_len, 1)
    i = jnp.arange(0, d_model, 2, dtype=jnp.float32)[None, :]      # (1, d_model//2)
    div = jnp.power(10000.0, i / d_model)
    angles = pos / div                                              # (max_len, d_model//2)
    pe = jnp.zeros((max_len, d_model), dtype=jnp.float32)
    pe = pe.at[:, 0::2].set(jnp.sin(angles))
    pe = pe.at[:, 1::2].set(jnp.cos(angles))
    return pe


def _pos_encode_kernel(x_ref, pe_ref, o_ref):
    # x_ref: (TB, TS, D), pe_ref: (1, TS, D) — leading-1 broadcasts over batch.
    o_ref[...] = (x_ref[...] + pe_ref[...]).astype(o_ref.dtype)


def _choose_tiles(B: int, S: int, D: int, itemsize: int,
                  target_tile_bytes: int = 2 << 20):
    """Pick (TB, TS) so one x/out tile is ~target_tile_bytes."""
    row_bytes = D * itemsize
    if S * row_bytes <= target_tile_bytes:
        # whole sequence fits in one tile -> fold batch in as well
        ts = S
        tb = max(1, min(B, target_tile_bytes // max(1, S * row_bytes)))
    else:
        # tile the sequence; keep the seq tile a multiple of 8 (sublane)
        ts = max(8, (target_tile_bytes // row_bytes) // 8 * 8)
        ts = min(ts, S)
        tb = 1
    return tb, ts


def pos_encoder(x: jnp.ndarray, pe: jnp.ndarray) -> jnp.ndarray:
    """x: (B, S, D); pe: (max_len, D). Returns x + pe[:S] broadcast over batch."""
    B, S, D = x.shape
    max_len = pe.shape[0]
    assert S <= max_len, f"sequence length {S} exceeds max_len {max_len}"

    # wrapper-side glue: slice to S, cast to x.dtype, add batch-singleton dim
    pe_slice = pe[:S, :].astype(x.dtype).reshape(1, S, D)

    tb, ts = _choose_tiles(B, S, D, x.dtype.itemsize)
    grid = (pl.cdiv(B, tb), pl.cdiv(S, ts))

    return pl.pallas_call(
        _pos_encode_kernel,
        out_shape=jax.ShapeDtypeStruct((B, S, D), x.dtype),
        grid=grid,
        in_specs=[
            pl.BlockSpec((tb, ts, D), lambda b, s: (b, s, 0)),
            pl.BlockSpec((1, ts, D), lambda b, s: (0, s, 0)),
        ],
        out_specs=pl.BlockSpec((tb, ts, D), lambda b, s: (b, s, 0)),
        compiler_params=pltpu.CompilerParams(
            dimension_semantics=("parallel", "parallel"),
        ),
    )(x, pe_slice)


if __name__ == "__main__":
    d_model = 32
    max_len = 16
    batch = 2
    seq = 8

    key = jax.random.PRNGKey(0)
    x = jax.random.normal(key, (batch, seq, d_model), dtype=jnp.float32)

    pe = _build_pe_table(d_model, max_len)

    out = pos_encoder(x, pe)
    out = jax.block_until_ready(out)

    # correctness check against plain-JAX reference
    ref = x + pe[:seq, :][None, :, :]
    assert out.shape == (batch, seq, d_model)
    assert jnp.allclose(out, ref, atol=1e-6), "mismatch vs reference"

    print("KERNEL_OK")
</pallas_src>

<mosaic_0001>
module attributes {stable_mosaic.version = 11 : i64} {
  func.func @_pos_encode_kernel(%arg0: i32, %arg1: i32, %arg2: memref<2x8x32xf32, #tpu.memory_space<vmem>>, %arg3: memref<1x8x32xf32, #tpu.memory_space<vmem>>, %arg4: memref<2x8x32xf32, #tpu.memory_space<vmem>>) attributes {dimension_semantics = [#tpu.dimension_semantics<parallel>, #tpu.dimension_semantics<parallel>], iteration_bounds = array<i64: 1, 1>, scalar_prefetch = 0 : i64, scratch_operands = 0 : i64, tpu.core_type = #tpu.core_type<tc>, window_params = [{transform_indices = @transform_0, window_bounds = array<i64: 2, 8, 32>}, {transform_indices = @transform_1, window_bounds = array<i64: 1, 8, 32>}, {transform_indices = @transform_2, window_bounds = array<i64: 2, 8, 32>}]} {
    %c0 = arith.constant 0 : index
    %c0_0 = arith.constant 0 : index
    %c0_1 = arith.constant 0 : index
    %0 = vector.load %arg2[%c0, %c0_0, %c0_1] : memref<2x8x32xf32, #tpu.memory_space<vmem>>, vector<2x8x32xf32>
    %c0_2 = arith.constant 0 : index
    %c0_3 = arith.constant 0 : index
    %c0_4 = arith.constant 0 : index
    %1 = vector.load %arg3[%c0_2, %c0_3, %c0_4] : memref<1x8x32xf32, #tpu.memory_space<vmem>>, vector<1x8x32xf32>
    %2 = vector.broadcast %1 : vector<1x8x32xf32> to vector<2x8x32xf32>
    %3 = arith.addf %0, %2 : vector<2x8x32xf32>
    %c0_5 = arith.constant 0 : index
    %c0_6 = arith.constant 0 : index
    %c0_7 = arith.constant 0 : index
    %4 = vector.load %arg4[%c0_5, %c0_6, %c0_7] : memref<2x8x32xf32, #tpu.memory_space<vmem>>, vector<2x8x32xf32>
    tpu.vector_store %arg4[%c0_5, %c0_6, %c0_7], %3 {strides = array<i32>} : memref<2x8x32xf32, #tpu.memory_space<vmem>>, vector<2x8x32xf32>,
    return
  }
  func.func @transform_0(%arg0: i32, %arg1: i32) -> (i32, i32, i32) {
    %c0_i32 = arith.constant 0 : i32
    %c0_i32_0 = arith.constant 0 : i32
    return %arg0, %arg1, %c0_i32 : i32, i32, i32
  }
  func.func @transform_1(%arg0: i32, %arg1: i32) -> (i32, i32, i32) {
    %c0_i32 = arith.constant 0 : i32
    %c0_i32_0 = arith.constant 0 : i32
    %c0_i32_1 = arith.constant 0 : i32
    return %c0_i32, %arg1, %c0_i32_0 : i32, i32, i32
  }
  func.func @transform_2(%arg0: i32, %arg1: i32) -> (i32, i32, i32) {
    %c0_i32 = arith.constant 0 : i32
    %c0_i32_0 = arith.constant 0 : i32
    return %arg0, %arg1, %c0_i32 : i32, i32, i32
  }
}

</mosaic_0001>

<bundles_post_ra>
// kernel: tpu_custom_call.1
= control target key start
LH: loop header
LB: loop body
LE: loop exit
PB: predicated region body
PF: predicated region fallthrough
CT: control target
= control target key end

     0   :  { %7 = vsyncpa [#allocation3], 0  ;;  %s170_s0 = inlined_call_operand.hbm [shape: f32[2,8,32], index: 0, kind: input, shape index: {}]   ;;  %s171_s1 = inlined_call_operand.hbm [shape: f32[1,8,32], index: 1, kind: input, shape index: {}]   ;;  %s172_s2 = inlined_call_operand.hbm [shape: f32[2,8,32], index: 2, kind: output, shape index: {}]  }
   0x1   :  { %8 = vsyncpa [#allocation6], 0 }
   0x2   :  { %9 = vsyncpa [#allocation4], 0  ;;  %s135_s9 = smov [#allocation2]  }
   0x3   :  { %s15_s10 = sshll.u32 %s135_s9, 4  ;;  %s16_s10 = int_to_ptr.vmem [resolvable:$true] %s15_s10 }
   0x4   :  { %s77_s11 = scalar_lea.vmem %s16_s10, 256  ;;  %p82_p1 = scmp.lt.s32.totalorder %s16_s10, %s16_s10 }
   0x5   :  { %p78_p0 = scmp.ne.s32.totalorder %s16_s10, %s77_s11  ;;  %p83_p2 = scmp.lt.s32.totalorder %s77_s11, %s77_s11 }
   0x7   :  { %p84_p3 = por %p83_p2, %p82_p1 }
   0x9   :  { %p85_p4 = pnand %p84_p3, %p78_p0 }
   0xb   :  { %88 = shalt.err (!%p85_p4)
}
   0xc   :  { %s136_s12 = smov 128   ;;  %s137_s13 = smov 8  }
   0xd   :  { %21 = dma.hbm_to_vmem [thread:$0]  %s170_s0, 256, %s16_s10, [#allocation3], %s136_s12, %s136_s12, %s137_s13  }
   0xe   :  { %s138_s16 = smov [#allocation5]  }
   0xf   :  { %s28_s17 = sshll.u32 %s138_s16, 4  ;;  %s29_s17 = int_to_ptr.vmem [resolvable:$true] %s28_s17 }
  0x10   :  { %s97_s18 = scalar_lea.vmem %s29_s17, 128  ;;  %p102_p6 = scmp.lt.s32.totalorder %s29_s17, %s29_s17 }
  0x11   :  { %p98_p5 = scmp.ne.s32.totalorder %s29_s17, %s97_s18  ;;  %p103_p7 = scmp.lt.s32.totalorder %s97_s18, %s97_s18 }
  0x13   :  { %p104_p8 = por %p103_p7, %p102_p6 }
  0x15   :  { %p105_p9 = pnand %p104_p8, %p98_p5 }
  0x17   :  { %108 = shalt.err (!%p105_p9)
}
  0x18   :  { %31 = dma.hbm_to_vmem [thread:$0]  %s171_s1, 128, %s29_s17, [#allocation6]  }
  0x19   :  { %129 = dma.done.wait [#allocation3], 256  }
  0x1a   :  { %130 = vsyncadd [#allocation3], 4294967040 }
  0x1b   :  { %131 = dma.done.wait [#allocation6], 128  }
  0x1c   :  { %132 = vsyncadd [#allocation6], 4294967168  ;;  %s139_s21 = smov [#allocation7]   ;;  %v38_v0 = vld [vmem:[#allocation2] sm:$0xff]  ;;  %v40_v1 = vld [vmem:[#allocation5] sm:$0xff]  ;;  %vm43_vm0 = vcmask 261120  }
  0x1d   :  { %s51_s0 = sshll.u32 %s139_s21, 4  ;;  %v39_v2 = vld [vmem:[#allocation2 + $0x8] sm:$0xff]  ;;  %v41_v3 = vadd.f32 %v40_v1, %v38_v0  ;;  %s52_s0 = int_to_ptr.vmem [resolvable:$true] %s51_s0 }
  0x1e   :  { %v42_v4 = vadd.f32 %v40_v1, %v39_v2  ;;  %s109_s22 = scalar_lea.vmem %s52_s0, 256  ;;  %p114_p11 = scmp.lt.s32.totalorder %s52_s0, %s52_s0 }
  0x1f   :  { %44 = vst.msk [vmem:[#allocation7] sm:$0xff] %vm43_vm0, %v41_v3  ;;  %p110_p10 = scmp.ne.s32.totalorder %s52_s0, %s109_s22  ;;  %p115_p12 = scmp.lt.s32.totalorder %s109_s22, %s109_s22 }
  0x20   :  { %45 = vst.msk [vmem:[#allocation7 + $0x8] sm:$0xff] %vm43_vm0, %v42_v4 }
  0x21   :  { %p116_p13 = por %p115_p12, %p114_p11 }
  0x23   :  { %p117_p0 = pnand %p116_p13, %p110_p10 }
  0x25   :  { %120 = shalt.err (!%p117_p0)
}
  0x26   :  { %57 = dma.vmem_to_hbm [thread:$0]  %s52_s0, 256, %s172_s2, [#allocation4], %s136_s12, %s136_s12, %s137_s13  }
  0x27   :  { %133 = dma.done.wait [#allocation4], 256  }
  0x28   :  { %134 = vsyncadd [#allocation4], 4294967040 }
  0x29   :  { %61 = vsyncpa [#allocation3], 1 }
  0x2a   :  { %62 = vsyncpa [#allocation6], 1 }
  0x2b   :  { %63 = vsyncpa [#allocation4], 1 }

</bundles_post_ra>
